<compile_context>
chip_gen: v7x
topology: tpu7x:2x2x1
jax: 0.10.0
libtpu: 0.0.40
codegen_flags: <defaults>
</compile_context>

<pallas_src>
import jax
import jax.numpy as jnp
from jax.experimental import pallas as pl
from jax.experimental.pallas import tpu as pltpu

_LANE = 128
_SUBLANE = 8
# 2048 rows x 128 lanes x 4 B = 1 MiB per array per pipeline buffer; with
# 1 input + 1 output, double-buffered, that is 4 MiB -> fits comfortably in
# the scoped-VMEM budget of v5e (16 MiB default), v6e (32 MiB) and v7x.
_MAX_TILE_ROWS = 2048


def _zero_kernel(src_ref, out_ref):
    # Faithful to `0 * src_emb`: elementwise multiply-by-zero on the VPU
    # (preserves dtype and NaN/Inf propagation of the PyTorch op).
    out_ref[...] = src_ref[...] * 0


def f_zero_op(g, src_emb, src_emb_in):
    """Pallas equivalent of f_zero_op.forward(g, src_emb, src_emb_in)."""
    del g, src_emb_in  # unused by the original module

    # TODO(synk): a lone 0*x op is better fused into its consumer (or emitted
    # by XLA) than paid as a standalone HBM round-trip; kept standalone here
    # to match the module boundary.

    orig_shape = src_emb.shape
    n = src_emb.size

    compiler_params = pltpu.CompilerParams(
        dimension_semantics=("parallel",),
        vmem_limit_bytes=32 * 1024 * 1024,
    )

    if n % _LANE == 0:
        # Lane-dense 2D view: last dim == 128.
        rows = n // _LANE
        x2d = src_emb.reshape(rows, _LANE)

        # Largest row tile (multiple of 8, <= _MAX_TILE_ROWS) that divides
        # `rows`; otherwise fall back to the whole array as one block (block
        # shape == full array dims is always legal under the (8,128) rule).
        tile_rows = rows
        if rows % _SUBLANE == 0:
            t = min(_MAX_TILE_ROWS, rows)
            t -= t % _SUBLANE
            while t >= _SUBLANE and rows % t != 0:
                t -= _SUBLANE
            if t >= _SUBLANE:
                tile_rows = t

        grid = (rows // tile_rows,)
        spec = pl.BlockSpec((tile_rows, _LANE), lambda i: (i, 0))

        out2d = pl.pallas_call(
            _zero_kernel,
            out_shape=jax.ShapeDtypeStruct((rows, _LANE), src_emb.dtype),
            grid_spec=pl.GridSpec(grid=grid, in_specs=[spec], out_specs=spec),
            compiler_params=compiler_params,
        )(x2d)
        return out2d.reshape(orig_shape)

    # Fallback (total size not a multiple of 128 lanes): single grid step,
    # block shape equals the full array extent.
    spec = pl.BlockSpec(orig_shape, lambda i: (0,) * len(orig_shape))
    return pl.pallas_call(
        _zero_kernel,
        out_shape=jax.ShapeDtypeStruct(orig_shape, src_emb.dtype),
        grid_spec=pl.GridSpec(grid=(1,), in_specs=[spec], out_specs=spec),
        compiler_params=compiler_params,
    )(src_emb)


if __name__ == "__main__":
    key = jax.random.PRNGKey(0)
    k_g, k_src, k_in = jax.random.split(key, 3)

    batch, seq, hidden = 2, 8, 32
    # `g` is a graph placeholder in the original module; dummy array for parity.
    g = jax.random.normal(k_g, (batch, seq), dtype=jnp.float32)
    src_emb = jax.random.normal(k_src, (batch, seq, hidden), dtype=jnp.float32)
    src_emb_in = jax.random.normal(k_in, (batch, seq, hidden), dtype=jnp.float32)

    out = f_zero_op(g, src_emb, src_emb_in)
    out = jax.block_until_ready(out)

    ref = 0 * src_emb
    assert out.shape == ref.shape and out.dtype == ref.dtype
    assert jnp.array_equal(out, ref)

    print("KERNEL_OK")
</pallas_src>

<mosaic_0001>
module attributes {stable_mosaic.version = 11 : i64} {
  func.func @_zero_kernel(%arg0: i32, %arg1: memref<4x128xf32, #tpu.memory_space<vmem>>, %arg2: memref<4x128xf32, #tpu.memory_space<vmem>>) attributes {dimension_semantics = [#tpu.dimension_semantics<parallel>], iteration_bounds = array<i64: 1>, scalar_prefetch = 0 : i64, scratch_operands = 0 : i64, tpu.core_type = #tpu.core_type<tc>, window_params = [{transform_indices = @transform_0, window_bounds = array<i64: 4, 128>}, {transform_indices = @transform_1, window_bounds = array<i64: 4, 128>}]} {
    %c0 = arith.constant 0 : index
    %c0_0 = arith.constant 0 : index
    %0 = vector.load %arg1[%c0, %c0_0] : memref<4x128xf32, #tpu.memory_space<vmem>>, vector<4x128xf32>
    %cst = arith.constant 0.000000e+00 : f32
    %1 = vector.broadcast %cst : f32 to vector<4x128xf32>
    %2 = arith.mulf %0, %1 : vector<4x128xf32>
    %c0_1 = arith.constant 0 : index
    %c0_2 = arith.constant 0 : index
    %3 = vector.load %arg2[%c0_1, %c0_2] : memref<4x128xf32, #tpu.memory_space<vmem>>, vector<4x128xf32>
    tpu.vector_store %arg2[%c0_1, %c0_2], %2 {strides = array<i32>} : memref<4x128xf32, #tpu.memory_space<vmem>>, vector<4x128xf32>,
    return
  }
  func.func @transform_0(%arg0: i32) -> (i32, i32) {
    %c0_i32 = arith.constant 0 : i32
    %c0_i32_0 = arith.constant 0 : i32
    return %arg0, %c0_i32 : i32, i32
  }
  func.func @transform_1(%arg0: i32) -> (i32, i32) {
    %c0_i32 = arith.constant 0 : i32
    %c0_i32_0 = arith.constant 0 : i32
    return %arg0, %c0_i32 : i32, i32
  }
}

</mosaic_0001>

<bundles_post_ra>
// kernel: tpu_custom_call.1
= control target key start
LH: loop header
LB: loop body
LE: loop exit
PB: predicated region body
PF: predicated region fallthrough
CT: control target
= control target key end

     0   :  { %6 = vsyncpa [#allocation3], 0  ;;  %s125_s0 = inlined_call_operand.hbm [shape: f32[4,128], index: 0, kind: input, shape index: {}]   ;;  %s126_s1 = inlined_call_operand.hbm [shape: f32[4,128], index: 1, kind: output, shape index: {}]  }
   0x1   :  { %7 = vsyncpa [#allocation4], 0  ;;  %s89_s6 = smov [#allocation2]   ;;  %s41_s10 = scalar_lea.hbm %s125_s0, 64 }
   0x2   :  { %s14_s7 = sshll.u32 %s89_s6, 4  ;;  %p42_p0 = scmp.ne.s32.totalorder %s125_s0, %s41_s10  ;;  %s15_s7 = int_to_ptr.vmem [resolvable:$true] %s14_s7 }
   0x3   :  { %p45_p1 = scmp.lt.u32.totalorder %s41_s10, %s125_s0 }
   0x5   :  { %p47_p2 = pnand %p45_p1, %p42_p0 }
   0x7   :  { %50 = shalt.err (!%p47_p2)
}
   0x8   :  { %s51_s15 = scalar_lea.vmem %s15_s7, 64  ;;  %p56_p4 = scmp.lt.s32.totalorder %s15_s7, %s15_s7 }
   0x9   :  { %p52_p3 = scmp.ne.s32.totalorder %s15_s7, %s51_s15  ;;  %p57_p5 = scmp.lt.s32.totalorder %s51_s15, %s51_s15 }
   0xb   :  { %p58_p6 = por %p57_p5, %p56_p4 }
   0xd   :  { %p59_p7 = pnand %p58_p6, %p52_p3 }
   0xf   :  { %62 = shalt.err (!%p59_p7)
}
  0x10   :  { %17 = dma.hbm_to_vmem [thread:$0]  %s125_s0, 64, %s15_s7, [#allocation3]  }
  0x11   :  { %85 = dma.done.wait [#allocation3], 64  }
  0x12   :  { %86 = vsyncadd [#allocation3], 4294967232  ;;  %s90_s18 = smov [#allocation5]   ;;  %v21_v0 = vld [vmem:[#allocation2] sm:$0xf] }
  0x13   :  { %s30_s19 = sshll.u32 %s90_s18, 4  ;;  %v22_v1 = vmul.f32 0.0, %v21_v0  ;;  %s31_s19 = int_to_ptr.vmem [resolvable:$true] %s30_s19 }
  0x14   :  { %s63_s20 = scalar_lea.vmem %s31_s19, 64  ;;  %p68_p9 = scmp.lt.s32.totalorder %s31_s19, %s31_s19 }
  0x15   :  { %23 = vst [vmem:[#allocation5] sm:$0xf] %v22_v1  ;;  %p64_p8 = scmp.ne.s32.totalorder %s31_s19, %s63_s20  ;;  %p69_p10 = scmp.lt.s32.totalorder %s63_s20, %s63_s20 }
  0x17   :  { %p70_p11 = por %p69_p10, %p68_p9 }
  0x19   :  { %p71_p12 = pnand %p70_p11, %p64_p8 }
  0x1b   :  { %74 = shalt.err (!%p71_p12)
}
  0x1c   :  { %s75_s23 = scalar_lea.hbm %s126_s1, 64 }
  0x1d   :  { %p76_p13 = scmp.ne.s32.totalorder %s126_s1, %s75_s23  ;;  %p79_p0 = scmp.lt.u32.totalorder %s75_s23, %s126_s1 }
  0x1f   :  { %p81_p1 = pnand %p79_p0, %p76_p13 }
  0x21   :  { %84 = shalt.err (!%p81_p1)
}
  0x22   :  { %33 = dma.vmem_to_hbm [thread:$0]  %s31_s19, 64, %s126_s1, [#allocation4]  }
  0x23   :  { %87 = dma.done.wait [#allocation4], 64  }
  0x24   :  { %88 = vsyncadd [#allocation4], 4294967232 }
  0x25   :  { %37 = vsyncpa [#allocation3], 1 }
  0x26   :  { %38 = vsyncpa [#allocation4], 1 }

</bundles_post_ra>
